<compile_context>
chip_gen: v7x
topology: tpu7x:2x2x1
jax: 0.10.0
libtpu: 0.0.40
codegen_flags: <defaults>
</compile_context>

<pallas_src>
import jax
import jax.numpy as jnp
from jax.experimental import pallas as pl
from jax.experimental.pallas import tpu as pltpu


def _z_y_kernel(z_ref, e_ref, w_ref, b_ref, o_ref):
    # In-kernel cast: no separate XLA cast pass over HBM.
    zf = z_ref[...].astype(jnp.float32)                       # (rows, lanes) in {0., 1.}
    # Duplicate each z lane into an adjacent (k=0, k=1) lane pair via a 0/1
    # matmul: zdup[r, 2l+k] = zf[r, l].  Exact for binary operands.
    zdup = jnp.dot(zf, e_ref[...],
                   preferred_element_type=jnp.float32)        # (rows, 2*lanes)
    # Affine map of z, already interleaved over k -> one lane-dense store.
    o_ref[...] = zdup * w_ref[...] + b_ref[...]


def _affine_tables(phi, mask_w, lanes, n_class):
    """Tiny wrapper-side constants: interleaved per-(c,k) weight/bias rows
    (lane-tiled to `lanes`) and the (lanes, 2*lanes) 0/1 duplication matrix."""
    phi = phi.astype(jnp.float32)
    mask_w = mask_w.astype(jnp.float32)
    m00, m01 = mask_w[0, 0], mask_w[0, 1]
    m10, m11 = mask_w[1, 0], mask_w[1, 1]
    one_m_phi = 1.0 - phi
    bias = m00 * phi + m01 * one_m_phi                         # (C, 2)
    weight = (m10 - m00) * phi + (m11 - m01) * one_m_phi       # (C, 2)
    b_row = bias.reshape(1, 2 * n_class)                       # lane index = 2c + k
    w_row = weight.reshape(1, 2 * n_class)
    rep = lanes // n_class
    if rep > 1:
        b_row = jnp.tile(b_row, (1, rep))
        w_row = jnp.tile(w_row, (1, rep))
    l_idx = jnp.arange(lanes, dtype=jnp.int32)[:, None]
    m_idx = jnp.arange(2 * lanes, dtype=jnp.int32)[None, :]
    e = (l_idx == m_idx // 2).astype(jnp.float32)              # (lanes, 2*lanes)
    return e, w_row, b_row


def z_y_forward(z, phi, mask_w):
    """Pallas implementation of Z_Y.forward.

    z:      (B, C) integer array with values in {0, 1}
    phi:    (C, 2) float32  -- self.phi.weight
    mask_w: (2, 2) float32  -- self.mask_z.weight
    returns (B, C, 2) float32
    """
    B, C = z.shape
    LANES = 128

    # Fast path: flatten the (b, c) stream onto full 128-lane rows so stores
    # are unmasked and lane-dense even when n_class < 128.
    flat = (C <= LANES) and (LANES % C == 0) and ((B * C) % LANES == 0)
    if flat:
        lanes = LANES
        zv = z.reshape((B * C) // LANES, LANES)    # free metadata reshape
    else:
        # General fallback: one batch row per sublane row, full class axis on lanes.
        # TODO(synk): for very large n_class the (C, 2C) duplication matrix should
        # be C-tiled; n_class is a class count (small) in this module.
        lanes = C
        zv = z
    rows_total = zv.shape[0]

    e, w_row, b_row = _affine_tables(phi, mask_w, lanes, C)

    # Row tile: ~4 MiB of z+out per block (amortizes the ~0.35 us per-step
    # overhead, stays far under scoped-VMEM limits with double buffering on
    # v5e/v6e/v7x), sublane-aligned; large inputs get many "parallel" steps
    # so v7x's two TensorCores both get work.
    bytes_per_row = (zv.dtype.itemsize + 8) * lanes
    if rows_total <= 8:
        rows = rows_total
    else:
        target = max(8, ((4 * 1024 * 1024) // bytes_per_row) // 8 * 8)
        rows = min((rows_total // 8) * 8, target, 4096)
    grid = (pl.cdiv(rows_total, rows),)

    out2d = pl.pallas_call(
        _z_y_kernel,
        out_shape=jax.ShapeDtypeStruct((rows_total, 2 * lanes), jnp.float32),
        grid=grid,
        in_specs=[
            pl.BlockSpec((rows, lanes), lambda i: (i, 0)),        # z (row-tiled)
            pl.BlockSpec((lanes, 2 * lanes), lambda i: (0, 0)),   # duplication matrix (resident)
            pl.BlockSpec((1, 2 * lanes), lambda i: (0, 0)),       # weight row (resident)
            pl.BlockSpec((1, 2 * lanes), lambda i: (0, 0)),       # bias row (resident)
        ],
        out_specs=pl.BlockSpec((rows, 2 * lanes), lambda i: (i, 0)),
        compiler_params=pltpu.CompilerParams(
            dimension_semantics=("parallel",)),
    )(zv, e, w_row, b_row)

    # Row-major (rows_total, 2*lanes) is exactly the (B, C, 2) element order
    # (flat index = 2*(b*C + c) + k): free reshape, no transpose HBM pass.
    return out2d.reshape(B, C, 2)


def _reference(z, phi, mask_w):
    """Pure-JAX transcription of the PyTorch forward (sanity check)."""
    z_y = phi                                                        # (C, 2)
    _z_y = 1.0 - z_y
    z_y_ = jnp.concatenate([z_y, _z_y], axis=1).reshape(-1, 2, 2)    # (C, 2, 2)
    musk = jnp.take(mask_w, z, axis=0)[:, :, None, :]                # (B, C, 1, 2)
    out = jnp.matmul(musk, z_y_)                                     # (B, C, 1, 2)
    return jnp.squeeze(out, axis=2)                                  # (B, C, 2)


if __name__ == "__main__":
    init1, init2 = 0.9, 0.2
    na_init1, na_init2 = 0.7, 0.4

    def make_phi(n_class):
        # Build phi.weight exactly as the PyTorch __init__ does.
        p = jnp.tile(jnp.array([[init1, init2]], jnp.float32), (n_class, 1))
        p = p.at[0, 0].set(na_init1)
        p = p.at[0, 1].set(na_init2)
        return p

    mask_w = jnp.array([[0.0, 1.0], [1.0, 0.0]], jnp.float32)
    k1, k2 = jax.random.split(jax.random.PRNGKey(0))

    # Case 1: lane-packed fast path (C divides 128, B*C a multiple of 128).
    B1, C1 = 64, 16
    z1 = jax.random.randint(k1, (B1, C1), 0, 2, jnp.int32)
    out1 = jax.block_until_ready(z_y_forward(z1, make_phi(C1), mask_w))
    assert out1.shape == (B1, C1, 2), out1.shape
    ref1 = _reference(z1, make_phi(C1), mask_w)
    assert jnp.allclose(out1, ref1, atol=1e-5, rtol=1e-5), (
        float(jnp.max(jnp.abs(out1 - ref1))))

    # Case 2: general row-wise fallback (B*C not a multiple of 128).
    B2, C2 = 7, 64
    z2 = jax.random.randint(k2, (B2, C2), 0, 2, jnp.int32)
    out2 = jax.block_until_ready(z_y_forward(z2, make_phi(C2), mask_w))
    assert out2.shape == (B2, C2, 2), out2.shape
    ref2 = _reference(z2, make_phi(C2), mask_w)
    assert jnp.allclose(out2, ref2, atol=1e-5, rtol=1e-5), (
        float(jnp.max(jnp.abs(out2 - ref2))))

    print("KERNEL_OK")
</pallas_src>

<mosaic_0001>
module attributes {stable_mosaic.version = 11 : i64} {
  func.func @_z_y_kernel(%arg0: i32, %arg1: memref<8x128xi32, #tpu.memory_space<vmem>>, %arg2: memref<128x256xf32, #tpu.memory_space<vmem>>, %arg3: memref<1x256xf32, #tpu.memory_space<vmem>>, %arg4: memref<1x256xf32, #tpu.memory_space<vmem>>, %arg5: memref<8x256xf32, #tpu.memory_space<vmem>>) attributes {dimension_semantics = [#tpu.dimension_semantics<parallel>], iteration_bounds = array<i64: 1>, scalar_prefetch = 0 : i64, scratch_operands = 0 : i64, tpu.core_type = #tpu.core_type<tc>, window_params = [{transform_indices = @transform_0, window_bounds = array<i64: 8, 128>}, {pipeline_mode = #tpu.pipeline_mode<synchronous>, transform_indices = @transform_1, window_bounds = array<i64: 128, 256>}, {pipeline_mode = #tpu.pipeline_mode<synchronous>, transform_indices = @transform_2, window_bounds = array<i64: 1, 256>}, {pipeline_mode = #tpu.pipeline_mode<synchronous>, transform_indices = @transform_3, window_bounds = array<i64: 1, 256>}, {transform_indices = @transform_4, window_bounds = array<i64: 8, 256>}]} {
    %c0 = arith.constant 0 : index
    %c0_0 = arith.constant 0 : index
    %0 = vector.load %arg1[%c0, %c0_0] : memref<8x128xi32, #tpu.memory_space<vmem>>, vector<8x128xi32>
    %1 = arith.sitofp %0 : vector<8x128xi32> to vector<8x128xf32>
    %c0_1 = arith.constant 0 : index
    %c0_2 = arith.constant 0 : index
    %2 = vector.load %arg2[%c0_1, %c0_2] : memref<128x256xf32, #tpu.memory_space<vmem>>, vector<128x256xf32>
    %cst = arith.constant dense<0.000000e+00> : vector<8x256xf32>
    %3 = tpu.matmul %1, %2, %cst {dimension_numbers = #tpu.dot_dimension_numbers<[1], [0], [0], [1], [0, 0, 1, 1], [], []>} : vector<8x128xf32>, vector<128x256xf32>, vector<8x256xf32> -> vector<8x256xf32>
    %c0_3 = arith.constant 0 : index
    %c0_4 = arith.constant 0 : index
    %4 = vector.load %arg3[%c0_3, %c0_4] : memref<1x256xf32, #tpu.memory_space<vmem>>, vector<1x256xf32>
    %5 = vector.broadcast %4 : vector<1x256xf32> to vector<8x256xf32>
    %6 = arith.mulf %3, %5 : vector<8x256xf32>
    %c0_5 = arith.constant 0 : index
    %c0_6 = arith.constant 0 : index
    %7 = vector.load %arg4[%c0_5, %c0_6] : memref<1x256xf32, #tpu.memory_space<vmem>>, vector<1x256xf32>
    %8 = vector.broadcast %7 : vector<1x256xf32> to vector<8x256xf32>
    %9 = arith.addf %6, %8 : vector<8x256xf32>
    %c0_7 = arith.constant 0 : index
    %c0_8 = arith.constant 0 : index
    %10 = vector.load %arg5[%c0_7, %c0_8] : memref<8x256xf32, #tpu.memory_space<vmem>>, vector<8x256xf32>
    tpu.vector_store %arg5[%c0_7, %c0_8], %9 {strides = array<i32>} : memref<8x256xf32, #tpu.memory_space<vmem>>, vector<8x256xf32>,
    return
  }
  func.func @transform_0(%arg0: i32) -> (i32, i32) {
    %c0_i32 = arith.constant 0 : i32
    %c0_i32_0 = arith.constant 0 : i32
    return %arg0, %c0_i32 : i32, i32
  }
  func.func @transform_1(%arg0: i32) -> (i32, i32) {
    %c0_i32 = arith.constant 0 : i32
    %c0_i32_0 = arith.constant 0 : i32
    %c0_i32_1 = arith.constant 0 : i32
    return %c0_i32, %c0_i32_0 : i32, i32
  }
  func.func @transform_2(%arg0: i32) -> (i32, i32) {
    %c0_i32 = arith.constant 0 : i32
    %c0_i32_0 = arith.constant 0 : i32
    %c0_i32_1 = arith.constant 0 : i32
    return %c0_i32, %c0_i32_0 : i32, i32
  }
  func.func @transform_3(%arg0: i32) -> (i32, i32) {
    %c0_i32 = arith.constant 0 : i32
    %c0_i32_0 = arith.constant 0 : i32
    %c0_i32_1 = arith.constant 0 : i32
    return %c0_i32, %c0_i32_0 : i32, i32
  }
  func.func @transform_4(%arg0: i32) -> (i32, i32) {
    %c0_i32 = arith.constant 0 : i32
    %c0_i32_0 = arith.constant 0 : i32
    return %arg0, %c0_i32 : i32, i32
  }
}

</mosaic_0001>

<bundles_post_ra>
// kernel: tpu_custom_call.1
= control target key start
LH: loop header
LB: loop body
LE: loop exit
PB: predicated region body
PF: predicated region fallthrough
CT: control target
= control target key end

     0   :  { %9 = vsyncpa [#allocation3], 0  ;;  %s385_s0 = inlined_call_operand.hbm [shape: s32[8,128], index: 0, kind: input, shape index: {}]   ;;  %s386_s1 = inlined_call_operand.hbm [shape: f32[128,256], index: 1, kind: input, shape index: {}]   ;;  %s387_s2 = inlined_call_operand.vmem [shape: f32[1,256], index: 2, kind: input, shape index: {}]   ;;  %s388_s3 = inlined_call_operand.vmem [shape: f32[1,256], index: 3, kind: input, shape index: {}]   ;;  %s389_s4 = inlined_call_operand.hbm [shape: f32[8,256], index: 4, kind: output, shape index: {}]  }
   0x1   :  { %10 = vsyncpa [#allocation6], 0 }
   0x2   :  { %11 = vsyncpa [#allocation4], 0  ;;  %s305_s15 = smov [#allocation2]   ;;  %s306_s17 = smov [#allocation5]  }
   0x3   :  { %s18_s16 = sshll.u32 %s305_s15, 4  ;;  %s27_s18 = sshll.u32 %s306_s17, 4  ;;  %s19_s16 = int_to_ptr.vmem [resolvable:$true] %s18_s16  ;;  %s336_s18 = int_to_ptr.vmem [resolvable:$true] %s27_s18 }
   0x4   :  { %s233_s21 = scalar_lea.hbm %s385_s0, 128 }
   0x5   :  { %p234_p0 = scmp.ne.s32.totalorder %s385_s0, %s233_s21  ;;  %p237_p1 = scmp.lt.u32.totalorder %s233_s21, %s385_s0 }
   0x7   :  { %p239_p2 = pnand %p237_p1, %p234_p0 }
   0x9   :  { %242 = shalt.err (!%p239_p2)
}
   0xa   :  { %s243_s26 = scalar_lea.vmem %s19_s16, 128  ;;  %p248_p4 = scmp.lt.s32.totalorder %s19_s16, %s19_s16 }
   0xb   :  { %p244_p3 = scmp.ne.s32.totalorder %s19_s16, %s243_s26  ;;  %p249_p5 = scmp.lt.s32.totalorder %s243_s26, %s243_s26 }
   0xd   :  { %p250_p6 = por %p249_p5, %p248_p4 }
   0xf   :  { %p251_p7 = pnand %p250_p6, %p244_p3 }
  0x11   :  { %254 = shalt.err (!%p251_p7)
}
  0x12   :  { %21 = dma.hbm_to_vmem [thread:$0]  %s385_s0, 128, %s19_s16, [#allocation3]  }
  0x13   :  { %s255_s5 = scalar_lea.hbm %s386_s1, 4096 }
  0x14   :  { %p256_p8 = scmp.ne.s32.totalorder %s386_s1, %s255_s5  ;;  %p259_p9 = scmp.lt.u32.totalorder %s255_s5, %s386_s1 }
  0x16   :  { %p261_p10 = pnand %p259_p9, %p256_p8 }
  0x18   :  { %264 = shalt.err (!%p261_p10)
}
  0x19   :  { %s265_s10 = scalar_lea.vmem %s336_s18, 4096  ;;  %p270_p12 = scmp.lt.s32.totalorder %s336_s18, %s336_s18 }
  0x1a   :  { %p266_p11 = scmp.ne.s32.totalorder %s336_s18, %s265_s10  ;;  %p271_p13 = scmp.lt.s32.totalorder %s265_s10, %s265_s10 }
  0x1c   :  { %p272_p0 = por %p271_p13, %p270_p12 }
  0x1e   :  { %p273_p1 = pnand %p272_p0, %p266_p11 }
  0x20   :  { %276 = shalt.err (!%p273_p1)
}
  0x21   :  { %s307_s0 = smov 256   ;;  %s308_s11 = smov 16  }
  0x22   :  { %33 = dma.hbm_to_vmem [thread:$0]  %s386_s1, 4096, %s336_s18, [#allocation6], %s307_s0, %s307_s0, %s308_s11  }
  0x23   :  { %299 = dma.done.wait [#allocation3], 128  }
  0x24   :  { %300 = vsyncadd [#allocation3], 4294967168 }
  0x25   :  { %301 = dma.done.wait [#allocation6], 4096  }
  0x26   :  { %302 = vsyncadd [#allocation6], 4294963200  ;;  %v309_v0 = vmov 0.0   ;;  %v47_v1 = vld [vmem:[#allocation5 + $0x8] sm:$0xff]  ;;  %v49_v2 = vld [vmem:[#allocation5 + $0x18] sm:$0xff]  ;;  %v151_v51 = vlaneseq  ;;  %s310_s17 = smov [#allocation7]  }
  0x27   :  { %142 = vmatprep.mubr.f32.mxu0 %v309_v0  ;;  %v46_v3 = vld [vmem:[#allocation5] sm:$0xff]  ;;  %v195_v4 = vpack.c.bf16 %v49_v2, %v47_v1  ;;  %v48_v5 = vld [vmem:[#allocation5 + $0x10] sm:$0xff]  ;;  %v51_v6 = vld [vmem:[#allocation5 + $0x28] sm:$0xff]  ;;  %s185_s18 = sshll.u32 %s310_s17, 4  ;;  %s186_s18 = int_to_ptr.vmem [resolvable:$true] %s185_s18 }
  0x28   :  { %v53_v7 = vld [vmem:[#allocation5 + $0x38] sm:$0xff]  ;;  %v197_v8 = vpack.c.bf16 %v48_v5, %v46_v3  ;;  %v50_v10 = vld [vmem:[#allocation5 + $0x20] sm:$0xff]  ;;  %v52_v11 = vld [vmem:[#allocation5 + $0x30] sm:$0xff]  ;;  %v152_v52 = vshrl.u32 %v151_v51, 7  ;;  %p282_p3 = scmp.lt.s32.totalorder %s186_s18, %s186_s18 }
  0x29   :  { %v199_v9 = vpack.c.bf16 %v53_v7, %v51_v6  ;;  %v55_v12 = vld [vmem:[#allocation5 + $0x48] sm:$0xff]  ;;  %196 = vmatprep.subr.bf16.mxu0 %v195_v4  ;;  %v57_v13 = vld [vmem:[#allocation5 + $0x58] sm:$0xff]  ;;  %v201_v14 = vpack.c.bf16 %v52_v11, %v50_v10  ;;  %v54_v16 = vld [vmem:[#allocation5 + $0x40] sm:$0xff] }
  0x2a   :  { %198 = vmatpush1.bf16.msra.mxu0 %v197_v8  ;;  %v203_v15 = vpack.c.bf16 %v57_v13, %v55_v12  ;;  %v56_v17 = vld [vmem:[#allocation5 + $0x50] sm:$0xff]  ;;  %v59_v18 = vld [vmem:[#allocation5 + $0x68] sm:$0xff]  ;;  %v61_v19 = vld [vmem:[#allocation5 + $0x78] sm:$0xff]  ;;  %v153_v53 = vsub.s32 0, %v152_v52  ;;  %v157_v55 = vsub.s32 1, %v152_v52 }
  0x2b   :  { %200 = vmatprep.subr.bf16.mxu0 %v199_v9  ;;  %v205_v20 = vpack.c.bf16 %v56_v17, %v54_v16  ;;  %v207_v21 = vpack.c.bf16 %v61_v19, %v59_v18  ;;  %v58_v22 = vld [vmem:[#allocation5 + $0x60] sm:$0xff]  ;;  %v60_v23 = vld [vmem:[#allocation5 + $0x70] sm:$0xff]  ;;  %v63_v24 = vld [vmem:[#allocation5 + $0x88] sm:$0xff] }
  0x2c   :  { %v65_v25 = vld [vmem:[#allocation5 + $0x98] sm:$0xff]  ;;  %v209_v26 = vpack.c.bf16 %v60_v23, %v58_v22  ;;  %v62_v28 = vld [vmem:[#allocation5 + $0x80] sm:$0xff]  ;;  %v64_v29 = vld [vmem:[#allocation5 + $0x90] sm:$0xff] }
  0x2d   :  { %v211_v27 = vpack.c.bf16 %v65_v25, %v63_v24  ;;  %v67_v30 = vld [vmem:[#allocation5 + $0xa8] sm:$0xff]  ;;  %v69_v31 = vld [vmem:[#allocation5 + $0xb8] sm:$0xff]  ;;  %v213_v32 = vpack.c.bf16 %v64_v29, %v62_v28  ;;  %v66_v34 = vld [vmem:[#allocation5 + $0xa0] sm:$0xff] }
  0x2e   :  { %202 = vmatpush1.bf16.msra.mxu0 %v201_v14  ;;  %v215_v33 = vpack.c.bf16 %v69_v31, %v67_v30  ;;  %v68_v35 = vld [vmem:[#allocation5 + $0xb0] sm:$0xff]  ;;  %v71_v36 = vld [vmem:[#allocation5 + $0xc8] sm:$0xff]  ;;  %v73_v37 = vld [vmem:[#allocation5 + $0xd8] sm:$0xff] }
  0x2f   :  { %204 = vmatprep.subr.bf16.mxu0 %v203_v15  ;;  %v217_v38 = vpack.c.bf16 %v68_v35, %v66_v34  ;;  %v219_v39 = vpack.c.bf16 %v73_v37, %v71_v36  ;;  %v70_v40 = vld [vmem:[#allocation5 + $0xc0] sm:$0xff]  ;;  %v72_v41 = vld [vmem:[#allocation5 + $0xd0] sm:$0xff]  ;;  %v75_v42 = vld [vmem:[#allocation5 + $0xe8] sm:$0xff] }
  0x30   :  { %v77_v43 = vld [vmem:[#allocation5 + $0xf8] sm:$0xff]  ;;  %v221_v44 = vpack.c.bf16 %v72_v41, %v70_v40  ;;  %v74_v46 = vld [vmem:[#allocation5 + $0xe0] sm:$0xff]  ;;  %v76_v47 = vld [vmem:[#allocation5 + $0xf0] sm:$0xff] }
  0x31   :  { %v223_v45 = vpack.c.bf16 %v77_v43, %v75_v42  ;;  %v225_v48 = vpack.c.bf16 %v76_v47, %v74_v46  ;;  %v44_v49 = vld [vmem:[#allocation2] sm:$0xff] }
  0x32   :  { %206 = vmatpush1.bf16.msra.mxu0 %v205_v20  ;;  %v45_v50 = vcvt.s32.f32 %v44_v49  ;;  %v149_v54 = vld [vmem:[%s387_s2] sm:$0x3]  ;;  %s277_s2 = scalar_lea.vmem %s186_s18, 256 }
  0x33   :  { %208 = vmatprep.subr.bf16.mxu0 %v207_v21  ;;  %v163_v56 = vld [vmem:[%s388_s3] sm:$0x3]  ;;  %v154_v57 = vrot.slane %v149_v54, %v153_v53  ;;  %v158_v58 = vrot.slane %v149_v54, %v157_v55  ;;  %p278_p2 = scmp.ne.s32.totalorder %s186_s18, %s277_s2  ;;  %p283_p4 = scmp.lt.s32.totalorder %s277_s2, %s277_s2 }
  0x34   :  { %v168_v59 = vrot.slane %v163_v56, %v153_v53  ;;  %v172_v61 = vrot.slane %v163_v56, %v157_v55 }
  0x35   :  { %p284_p5 = por %p283_p4, %p282_p3 }
  0x36   :  { %210 = vmatpush1.bf16.msra.mxu0 %v209_v26 }
  0x37   :  { %212 = vmatprep.subr.bf16.mxu0 %v211_v27  ;;  %p285_p6 = pnand %p284_p5, %p278_p2 }
  0x3a   :  { %214 = vmatpush1.bf16.msra.mxu0 %v213_v32 }
  0x3b   :  { %216 = vmatprep.subr.bf16.mxu0 %v215_v33 }
  0x3e   :  { %218 = vmatpush1.bf16.msra.mxu0 %v217_v38 }
  0x3f   :  { %220 = vmatprep.subr.bf16.mxu0 %v219_v39 }
  0x42   :  { %222 = vmatpush1.bf16.msra.mxu0 %v221_v44 }
  0x43   :  { %224 = vmatprep.subr.bf16.mxu0 %v223_v45 }
  0x46   :  { %226 = vmatpush1.bf16.msra.mxu0 %v225_v48 }
  0x49   :  { %143 = vmatmul.mubr.f32.vlgmr.msra.gmra.mrb[0].mxu0 %v45_v50 }
 0x11c   :  { %v144_v60 = vpop.f32.mrb[0].mxu0 }
 0x11d   :  { %v161_v62 = vmul.f32 %v154_v57, %v144_v60  ;;  %v146_v63 = vpop.f32.mrb[1].mxu0 }
 0x11e   :  { %v162_v0 = vmul.f32 %v158_v58, %v146_v63 }
 0x11f   :  { %v175_v1 = vadd.f32 %v168_v59, %v161_v62 }
 0x120   :  { %v176_v2 = vadd.f32 %v172_v61, %v162_v0 }
 0x121   :  { %177 = vst [vmem:[#allocation7] sm:$0xff] %v175_v1 }
 0x122   :  { %178 = vst [vmem:[#allocation7 + $0x8] sm:$0xff] %v176_v2 }
 0x123   :  { %288 = shalt.err (!%p285_p6)
}
 0x124   :  { %s289_s20 = scalar_lea.hbm %s389_s4, 256 }
 0x125   :  { %p290_p7 = scmp.ne.s32.totalorder %s389_s4, %s289_s20  ;;  %p293_p8 = scmp.lt.u32.totalorder %s289_s20, %s389_s4 }
 0x127   :  { %p295_p9 = pnand %p293_p8, %p290_p7 }
 0x129   :  { %298 = shalt.err (!%p295_p9)
}
 0x12a   :  { %188 = dma.vmem_to_hbm [thread:$0]  %s186_s18, 256, %s389_s4, [#allocation4]  }
 0x12b   :  { %303 = dma.done.wait [#allocation4], 256  }
 0x12c   :  { %304 = vsyncadd [#allocation4], 4294967040 }
 0x12d   :  { %192 = vsyncpa [#allocation3], 1 }
 0x12e   :  { %193 = vsyncpa [#allocation6], 1 }
 0x12f   :  { %194 = vsyncpa [#allocation4], 1 }

</bundles_post_ra>
